<compile_context>
chip_gen: v7x
topology: tpu7x:2x2x1
jax: 0.10.0
libtpu: 0.0.40
codegen_flags: <defaults>
</compile_context>

<pallas_src>
import jax
import jax.numpy as jnp
from jax.experimental import pallas as pl
from jax.experimental.pallas import tpu as pltpu

# Logical sizes from the PyTorch module
IN_F = 3
HID_F = 2
OUT_F = 1

MAX_TILE_B = 1024  # batch rows per grid step (multiple of 8); tiny VMEM footprint


def mlp_kernel(x_ref, w1_ref, b1_ref, w2_ref, b2_ref, o_ref):
    # x_ref: (TB, 3) f32 in VMEM; w/b refs are tiny f32 arrays in SMEM.
    x = x_ref[...]
    x0 = x[:, 0:1]
    x1 = x[:, 1:2]
    x2 = x[:, 2:3]
    # hidden_j = relu(sum_k x_k * W1[j, k] + b1[j])   (W1 is (2, 3), PyTorch layout)
    h0 = jnp.maximum(
        x0 * w1_ref[0, 0] + x1 * w1_ref[0, 1] + x2 * w1_ref[0, 2] + b1_ref[0], 0.0)
    h1 = jnp.maximum(
        x0 * w1_ref[1, 0] + x1 * w1_ref[1, 1] + x2 * w1_ref[1, 2] + b1_ref[1], 0.0)
    # out = h0 * W2[0, 0] + h1 * W2[0, 1] + b2[0]     (W2 is (1, 2))
    o_ref[...] = h0 * w2_ref[0, 0] + h1 * w2_ref[0, 1] + b2_ref[0]


@jax.jit
def mlp_forward(x, w1, b1, w2, b2):
    """x: (B, 3) f32; w1: (2, 3); b1: (2,); w2: (1, 2); b2: (1,) — PyTorch layout."""
    B = x.shape[0]
    # Batch tile: multiple of 8 sublanes, capped at MAX_TILE_B.
    tb = min(MAX_TILE_B, ((B + 7) // 8) * 8)
    bp = ((B + tb - 1) // tb) * tb  # padded batch, multiple of tb
    xp = x.astype(jnp.float32)
    if bp != B:
        xp = jnp.pad(xp, ((0, bp - B), (0, 0)))  # padded rows discarded by the slice below

    out = pl.pallas_call(
        mlp_kernel,
        out_shape=jax.ShapeDtypeStruct((bp, OUT_F), jnp.float32),
        grid=(bp // tb,),
        in_specs=[
            pl.BlockSpec((tb, IN_F), lambda i: (i, 0)),          # x batch tile (VMEM)
            pl.BlockSpec(memory_space=pltpu.MemorySpace.SMEM),   # w1 (2, 3)
            pl.BlockSpec(memory_space=pltpu.MemorySpace.SMEM),   # b1 (2,)
            pl.BlockSpec(memory_space=pltpu.MemorySpace.SMEM),   # w2 (1, 2)
            pl.BlockSpec(memory_space=pltpu.MemorySpace.SMEM),   # b2 (1,)
        ],
        out_specs=pl.BlockSpec((tb, OUT_F), lambda i: (i, 0)),
        compiler_params=pltpu.CompilerParams(
            dimension_semantics=("parallel",)),
    )(xp,
      w1.astype(jnp.float32), b1.astype(jnp.float32),
      w2.astype(jnp.float32), b2.astype(jnp.float32))

    return out[:B]


if __name__ == "__main__":
    key = jax.random.PRNGKey(0)
    k_x, k_w1, k_b1, k_w2, k_b2 = jax.random.split(key, 5)

    B = 8
    x = jax.random.normal(k_x, (B, IN_F), jnp.float32)

    # Deterministic parameter init (uniform, roughly like PyTorch's default Linear init)
    w1 = jax.random.uniform(k_w1, (HID_F, IN_F), jnp.float32, -0.5, 0.5)
    b1 = jax.random.uniform(k_b1, (HID_F,), jnp.float32, -0.5, 0.5)
    w2 = jax.random.uniform(k_w2, (OUT_F, HID_F), jnp.float32, -0.5, 0.5)
    b2 = jax.random.uniform(k_b2, (OUT_F,), jnp.float32, -0.5, 0.5)

    out = jax.block_until_ready(mlp_forward(x, w1, b1, w2, b2))
    ref = jnp.maximum(x @ w1.T + b1, 0.0) @ w2.T + b2
    assert out.shape == (B, OUT_F)
    assert jnp.allclose(out, ref, atol=1e-5, rtol=1e-5), "mismatch vs reference"

    # Second check: batch not a multiple of 8 exercises the pad + slice path.
    B2 = 37
    x2 = jax.random.normal(jax.random.PRNGKey(1), (B2, IN_F), jnp.float32)
    out2 = jax.block_until_ready(mlp_forward(x2, w1, b1, w2, b2))
    ref2 = jnp.maximum(x2 @ w1.T + b1, 0.0) @ w2.T + b2
    assert out2.shape == (B2, OUT_F)
    assert jnp.allclose(out2, ref2, atol=1e-5, rtol=1e-5), "mismatch vs reference (padded batch)"

    print("KERNEL_OK")
</pallas_src>

<mosaic_0001>
module attributes {stable_mosaic.version = 11 : i64} {
  func.func @mlp_kernel(%arg0: i32, %arg1: memref<8x3xf32, #tpu.memory_space<vmem>>, %arg2: memref<2x3xf32, #tpu.memory_space<smem>>, %arg3: memref<2xf32, #tpu.memory_space<smem>>, %arg4: memref<1x2xf32, #tpu.memory_space<smem>>, %arg5: memref<1xf32, #tpu.memory_space<smem>>, %arg6: memref<8x1xf32, #tpu.memory_space<vmem>>) attributes {dimension_semantics = [#tpu.dimension_semantics<parallel>], iteration_bounds = array<i64: 1>, scalar_prefetch = 0 : i64, scratch_operands = 0 : i64, tpu.core_type = #tpu.core_type<tc>, window_params = [{transform_indices = @transform_0, window_bounds = array<i64: 8, 3>}, {transform_indices = @transform_1, window_bounds = array<i64: 2, 3>}, {transform_indices = @transform_2, window_bounds = array<i64: 2>}, {transform_indices = @transform_3, window_bounds = array<i64: 1, 2>}, {transform_indices = @transform_4, window_bounds = array<i64: 1>}, {transform_indices = @transform_5, window_bounds = array<i64: 8, 1>}]} {
    %c0 = arith.constant 0 : index
    %c0_0 = arith.constant 0 : index
    %0 = vector.load %arg1[%c0, %c0_0] : memref<8x3xf32, #tpu.memory_space<vmem>>, vector<8x3xf32>
    %1 = vector.extract_strided_slice %0 {offsets = [0, 0], sizes = [8, 1], strides = [1, 1]} : vector<8x3xf32> to vector<8x1xf32>
    %2 = vector.extract_strided_slice %0 {offsets = [0, 1], sizes = [8, 1], strides = [1, 1]} : vector<8x3xf32> to vector<8x1xf32>
    %3 = vector.extract_strided_slice %0 {offsets = [0, 2], sizes = [8, 1], strides = [1, 1]} : vector<8x3xf32> to vector<8x1xf32>
    %c0_1 = arith.constant 0 : index
    %c0_2 = arith.constant 0 : index
    %4 = memref.load %arg2[%c0_1, %c0_2] : memref<2x3xf32, #tpu.memory_space<smem>>
    %5 = vector.broadcast %4 : f32 to vector<8x1xf32>
    %6 = arith.mulf %1, %5 : vector<8x1xf32>
    %c0_3 = arith.constant 0 : index
    %c1 = arith.constant 1 : index
    %7 = memref.load %arg2[%c0_3, %c1] : memref<2x3xf32, #tpu.memory_space<smem>>
    %8 = vector.broadcast %7 : f32 to vector<8x1xf32>
    %9 = arith.mulf %2, %8 : vector<8x1xf32>
    %10 = arith.addf %6, %9 : vector<8x1xf32>
    %c0_4 = arith.constant 0 : index
    %c2 = arith.constant 2 : index
    %11 = memref.load %arg2[%c0_4, %c2] : memref<2x3xf32, #tpu.memory_space<smem>>
    %12 = vector.broadcast %11 : f32 to vector<8x1xf32>
    %13 = arith.mulf %3, %12 : vector<8x1xf32>
    %14 = arith.addf %10, %13 : vector<8x1xf32>
    %c0_5 = arith.constant 0 : index
    %15 = memref.load %arg3[%c0_5] : memref<2xf32, #tpu.memory_space<smem>>
    %16 = vector.broadcast %15 : f32 to vector<8x1xf32>
    %17 = arith.addf %14, %16 : vector<8x1xf32>
    %cst = arith.constant 0.000000e+00 : f32
    %18 = vector.broadcast %cst : f32 to vector<8x1xf32>
    %19 = arith.maximumf %17, %18 : vector<8x1xf32>
    %c1_6 = arith.constant 1 : index
    %c0_7 = arith.constant 0 : index
    %20 = memref.load %arg2[%c1_6, %c0_7] : memref<2x3xf32, #tpu.memory_space<smem>>
    %21 = vector.broadcast %20 : f32 to vector<8x1xf32>
    %22 = arith.mulf %1, %21 : vector<8x1xf32>
    %c1_8 = arith.constant 1 : index
    %c1_9 = arith.constant 1 : index
    %23 = memref.load %arg2[%c1_8, %c1_9] : memref<2x3xf32, #tpu.memory_space<smem>>
    %24 = vector.broadcast %23 : f32 to vector<8x1xf32>
    %25 = arith.mulf %2, %24 : vector<8x1xf32>
    %26 = arith.addf %22, %25 : vector<8x1xf32>
    %c1_10 = arith.constant 1 : index
    %c2_11 = arith.constant 2 : index
    %27 = memref.load %arg2[%c1_10, %c2_11] : memref<2x3xf32, #tpu.memory_space<smem>>
    %28 = vector.broadcast %27 : f32 to vector<8x1xf32>
    %29 = arith.mulf %3, %28 : vector<8x1xf32>
    %30 = arith.addf %26, %29 : vector<8x1xf32>
    %c1_12 = arith.constant 1 : index
    %31 = memref.load %arg3[%c1_12] : memref<2xf32, #tpu.memory_space<smem>>
    %32 = vector.broadcast %31 : f32 to vector<8x1xf32>
    %33 = arith.addf %30, %32 : vector<8x1xf32>
    %cst_13 = arith.constant 0.000000e+00 : f32
    %34 = vector.broadcast %cst_13 : f32 to vector<8x1xf32>
    %35 = arith.maximumf %33, %34 : vector<8x1xf32>
    %c0_14 = arith.constant 0 : index
    %c0_15 = arith.constant 0 : index
    %36 = memref.load %arg4[%c0_14, %c0_15] : memref<1x2xf32, #tpu.memory_space<smem>>
    %37 = vector.broadcast %36 : f32 to vector<8x1xf32>
    %38 = arith.mulf %19, %37 : vector<8x1xf32>
    %c0_16 = arith.constant 0 : index
    %c1_17 = arith.constant 1 : index
    %39 = memref.load %arg4[%c0_16, %c1_17] : memref<1x2xf32, #tpu.memory_space<smem>>
    %40 = vector.broadcast %39 : f32 to vector<8x1xf32>
    %41 = arith.mulf %35, %40 : vector<8x1xf32>
    %42 = arith.addf %38, %41 : vector<8x1xf32>
    %c0_18 = arith.constant 0 : index
    %43 = memref.load %arg5[%c0_18] : memref<1xf32, #tpu.memory_space<smem>>
    %44 = vector.broadcast %43 : f32 to vector<8x1xf32>
    %45 = arith.addf %42, %44 : vector<8x1xf32>
    %c0_19 = arith.constant 0 : index
    %c0_20 = arith.constant 0 : index
    %46 = vector.load %arg6[%c0_19, %c0_20] : memref<8x1xf32, #tpu.memory_space<vmem>>, vector<8x1xf32>
    tpu.vector_store %arg6[%c0_19, %c0_20], %45 {strides = array<i32>} : memref<8x1xf32, #tpu.memory_space<vmem>>, vector<8x1xf32>,
    return
  }
  func.func @transform_0(%arg0: i32) -> (i32, i32) {
    %c0_i32 = arith.constant 0 : i32
    %c0_i32_0 = arith.constant 0 : i32
    return %arg0, %c0_i32 : i32, i32
  }
  func.func @transform_1(%arg0: i32) -> (i32, i32) {
    %c0_i32 = arith.constant 0 : i32
    %c0_i32_0 = arith.constant 0 : i32
    %c0_i32_1 = arith.constant 0 : i32
    return %c0_i32, %c0_i32_0 : i32, i32
  }
  func.func @transform_2(%arg0: i32) -> i32 {
    %c0_i32 = arith.constant 0 : i32
    %c0_i32_0 = arith.constant 0 : i32
    return %c0_i32 : i32
  }
  func.func @transform_3(%arg0: i32) -> (i32, i32) {
    %c0_i32 = arith.constant 0 : i32
    %c0_i32_0 = arith.constant 0 : i32
    %c0_i32_1 = arith.constant 0 : i32
    return %c0_i32, %c0_i32_0 : i32, i32
  }
  func.func @transform_4(%arg0: i32) -> i32 {
    %c0_i32 = arith.constant 0 : i32
    %c0_i32_0 = arith.constant 0 : i32
    return %c0_i32 : i32
  }
  func.func @transform_5(%arg0: i32) -> (i32, i32) {
    %c0_i32 = arith.constant 0 : i32
    %c0_i32_0 = arith.constant 0 : i32
    return %arg0, %c0_i32 : i32, i32
  }
}

</mosaic_0001>

<bundles_post_ra>
// kernel: mlp_forward.1
= control target key start
LH: loop header
LB: loop body
LE: loop exit
PB: predicated region body
PF: predicated region fallthrough
CT: control target
= control target key end

     0   :  { %11 = vsyncpa [#allocation4], 0  ;;  %s227_s0 = inlined_call_operand.vmem [shape: f32[8,3], index: 0, kind: input, shape index: {}]   ;;  %s228_s1 = inlined_call_operand.vmem [shape: f32[2,3], index: 1, kind: input, shape index: {}]   ;;  %s229_s2 = inlined_call_operand.vmem [shape: f32[2], index: 2, kind: input, shape index: {}]   ;;  %s230_s3 = inlined_call_operand.vmem [shape: f32[1,2], index: 3, kind: input, shape index: {}]   ;;  %s231_s4 = inlined_call_operand.<no memory space> [shape: f32[1], index: 4, kind: input, shape index: {}]   ;;  %s232_s5 = inlined_call_operand.vmem [shape: f32[8,1], index: 5, kind: output, shape index: {}]  }
   0x1   :  { %12 = vsyncpa [#allocation6], 0  ;;  %s31_s20 = sshll.u32 %s229_s2, 4  ;;  %s21_s23 = sshll.u32 %s228_s1, 4  ;;  %s32_s20 = int_to_ptr.vmem [resolvable:$true] %s31_s20  ;;  %s22_s23 = int_to_ptr.vmem [resolvable:$true] %s21_s23 }
   0x2   :  { %s134_s24 = scalar_lea.vmem %s32_s20, 16  ;;  %p139_p1 = scmp.lt.s32.totalorder %s32_s20, %s32_s20 }
   0x3   :  { %p135_p0 = scmp.ne.s32.totalorder %s32_s20, %s134_s24  ;;  %p140_p2 = scmp.lt.s32.totalorder %s134_s24, %s134_s24 }
   0x5   :  { %p141_p3 = por %p140_p2, %p139_p1 }
   0x7   :  { %p142_p4 = pnand %p141_p3, %p135_p0 }
   0x9   :  { %145 = shalt.err (!%p142_p4)
}
   0xa   :  { %s174_s25 = smov [#allocation5]   ;;  %s146_s26 = scalar_lea.vmem %s22_s23, 32 }
   0xb   :  { %34 = dma.vmem_to_smem %s32_s20, 16, %s174_s25, [#allocation6]  }
   0xc   :  { %p147_p5 = scmp.ne.s32.totalorder %s22_s23, %s146_s26  ;;  %p151_p6 = scmp.lt.s32.totalorder %s22_s23, %s22_s23 }
   0xd   :  { %p152_p7 = scmp.lt.s32.totalorder %s146_s26, %s146_s26 }
   0xf   :  { %p153_p8 = por %p152_p7, %p151_p6 }
  0x11   :  { %p154_p9 = pnand %p153_p8, %p147_p5 }
  0x13   :  { %157 = shalt.err (!%p154_p9)
}
  0x14   :  { %s175_s2 = smov [#allocation3]   ;;  %s41_s28 = sshll.u32 %s230_s3, 4  ;;  %s42_s28 = int_to_ptr.vmem [resolvable:$true] %s41_s28 }
  0x15   :  { %24 = dma.vmem_to_smem %s22_s23, 32, %s175_s2, [#allocation4]  }
  0x16   :  { %s158_s29 = scalar_lea.vmem %s42_s28, 16  ;;  %p163_p11 = scmp.lt.s32.totalorder %s42_s28, %s42_s28 }
  0x17   :  { %p159_p10 = scmp.ne.s32.totalorder %s42_s28, %s158_s29  ;;  %p164_p12 = scmp.lt.s32.totalorder %s158_s29, %s158_s29 }
  0x19   :  { %p165_p13 = por %p164_p12, %p163_p11 }
  0x1b   :  { %p166_p0 = pnand %p165_p13, %p159_p10 }
  0x1d   :  { %169 = shalt.err (!%p166_p0)
}
  0x1e   :  { %s176_s30 = smov [#allocation7]  }
  0x1f   :  { %44 = dma.vmem_to_smem %s42_s28, 16, %s176_s30, [#allocation6]  }
  0x20   :  { %170 = dma.done.wait [#allocation4], 32  }
  0x21   :  { %171 = vsyncadd [#allocation4], 4294967264 }
  0x22   :  { %172 = dma.done.wait [#allocation6], 32  }
  0x23   :  { %173 = vsyncadd [#allocation6], 4294967264 }
  0x24   :  { %56 = sfence }
  0x25   :  { %s122_s6 = sld [smem:[#allocation3 + $0x1]]  ;;  %s123_s7 = sld [smem:[#allocation3 + $0x2]]  ;;  %v57_v0 = vld [vmem:[%s227_s0] sm:$0xff]  ;;  %v112_v31 = vstv %s231_s4  ;;  %vm114_vm0 = vcmask 7168  }
  0x26   :  { %s125_s8 = sld [smem:[#allocation3 + $0x81]]  ;;  %s126_s9 = sld [smem:[#allocation3 + $0x82]] }
  0x27   :  { %s177_s11 = smov 127   ;;  %s178_s12 = smov 126  }
  0x28   :  { %s58_s13 = sld [smem:[#allocation3]]  ;;  %s127_s0 = sld [smem:[#allocation5 + $0x1]] }
  0x29   :  { %s124_s14 = sld [smem:[#allocation3 + $0x80]]  ;;  %s128_s17 = sld [smem:[#allocation7 + $0x1]] }
  0x2a   :  { %s77_s15 = sld [smem:[#allocation5]] }
  0x2b   :  { %v62_v1 = vstv %s122_s6  ;;  %v70_v3 = vstv %s123_s7  ;;  %s104_s16 = sld [smem:[#allocation7]] }
  0x2c   :  { %v63_v2 = vmul.f32 %v62_v1, %v57_v0  ;;  %v71_v4 = vmul.f32 %v70_v3, %v57_v0  ;;  %v85_v5 = vstv %s125_s8  ;;  %v93_v6 = vstv %s126_s9 }
  0x2d   :  { %v86_v7 = vmul.f32 %v85_v5, %v57_v0  ;;  %v94_v8 = vmul.f32 %v93_v6, %v57_v0 }
  0x2e   :  { %65 = vrot.lane.b32.xlu0 %v63_v2, %s177_s11  ;;  %73 = vrot.lane.b32.xlu1 %v71_v4, %s178_s12  ;;  %v59_v9 = vstv %s58_s13  ;;  %v101_v22 = vstv %s127_s0 }
  0x2f   :  { %v60_v10 = vmul.f32 %v59_v9, %v57_v0  ;;  %v82_v11 = vstv %s124_s14  ;;  %v108_v27 = vstv %s128_s17 }
  0x30   :  { %v83_v15 = vmul.f32 %v82_v11, %v57_v0  ;;  %v78_v16 = vstv %s77_s15 }
  0x31   :  { %v105_v26 = vstv %s104_s16 }
  0x32   :  { %88 = vrot.lane.b32.xlu0 %v86_v7, %s177_s11  ;;  %96 = vrot.lane.b32.xlu1 %v94_v8, %s178_s12 }
  0xa0   :  { %v66_v12 = vpop.permute.xlu0 %65  ;;  %v74_v14 = vpop.permute.xlu1 %73 }
  0xa1   :  { %v68_v13 = vadd.f32 %v66_v12, %v60_v10 }
  0xa3   :  { %v76_v17 = vadd.f32 %v74_v14, %v68_v13 }
  0xa4   :  { %v89_v18 = vpop.permute.xlu0 %88  ;;  %v97_v21 = vpop.permute.xlu1 %96 }
  0xa5   :  { %v79_v19 = vadd.f32 %v78_v16, %v76_v17  ;;  %v91_v20 = vadd.f32 %v89_v18, %v83_v15 }
  0xa7   :  { %v99_v23 = vadd.f32 %v97_v21, %v91_v20  ;;  %v80_v24 = vmax.f32 %v79_v19, 0.0 }
  0xa9   :  { %v102_v25 = vadd.f32 %v101_v22, %v99_v23  ;;  %v106_v29 = vmul.f32 %v105_v26, %v80_v24 }
  0xab   :  { %v103_v28 = vmax.f32 %v102_v25, 0.0 }
  0xad   :  { %v109_v30 = vmul.f32 %v108_v27, %v103_v28 }
  0xaf   :  { %v110_v32 = vadd.f32 %v109_v30, %v106_v29 }
  0xb1   :  { %v113_v33 = vadd.f32 %v112_v31, %v110_v32 }
  0xb3   :  { %115 = vst.msk [vmem:[%s232_s5] sm:$0xff] %vm114_vm0, %v113_v33 }
  0xb4   :  { %120 = vsyncpa [#allocation4], 1 }
  0xb5   :  { %121 = vsyncpa [#allocation6], 1 }

</bundles_post_ra>
